<compile_context>
chip_gen: v5e
topology: v5e:2x2
jax: 0.10.0
libtpu: 0.0.40
codegen_flags: <defaults>
</compile_context>

<pallas_src>
import jax
import jax.numpy as jnp
from jax.experimental import pallas as pl
from jax.experimental.pallas import tpu as pltpu


def _gated_fusion_kernel(x1_ref, x2_ref, scal_ref, wg_ref,
                         w1_ref, b1_ref, w2_ref, b2_ref, out_ref):
    x1 = x1_ref[...]                                   # (tm, D) f32
    x2 = x2_ref[...]                                   # (tm, D) f32
    wg = wg_ref[...]                                   # (2, D)  f32

    # Gate logit on VPU (+ one XLU cross-lane reduce). Keeps the MXU free of
    # width-1 pushes; push count is independent of output width, so the old
    # two (tm,D)@(D,1) dots cost as much MXU cadence as fc1+fc2 at small D.
    g_logit = (jnp.sum(x1 * wg[0:1, :] + x2 * wg[1:2, :],
                       axis=-1, keepdims=True)
               + scal_ref[0])                          # (tm, 1)
    gate = jax.nn.sigmoid(g_logit)

    # Blend: one fewer VPU op per element than gate*x1 + (1-gate)*x2.
    fused = x2 + gate * (x1 - x2)                      # (tm, D) f32

    # fc1 (D -> D); cast next to the MXU op so bf16 weights also work.
    h = jnp.dot(fused.astype(w1_ref.dtype), w1_ref[...],
                preferred_element_type=jnp.float32) + b1_ref[...]

    # PReLU, single shared slope (scalar from SMEM).
    h = jnp.where(h > 0, h, scal_ref[1] * h)

    # Dropout(p=0) == identity; fc2 (D -> Dout).
    out = jnp.dot(h.astype(w2_ref.dtype), w2_ref[...],
                  preferred_element_type=jnp.float32) + b2_ref[...]

    out_ref[...] = out.astype(out_ref.dtype)


def _round_up(x, m):
    return ((x + m - 1) // m) * m


def _chip_info():
    """(vmem_capacity_bytes, num_tensorcores_per_chip), with safe fallbacks."""
    kind = ""
    try:
        kind = jax.devices()[0].device_kind.lower()
    except Exception:
        pass
    dual_tc = "v7" in kind
    vmem = None
    try:
        vmem = int(pltpu.get_tpu_info().vmem_capacity_bytes)
    except Exception:
        vmem = None
    if vmem is None or vmem <= 0:
        vmem = (64 if dual_tc else 128) * 1024 * 1024
    return vmem, (2 if dual_tc else 1)


def _pick_row_tile(n_rows, d, tm_max, vmem_capacity, num_tc):
    """Multiple-of-8 row tile sized against a per-generation VMEM budget."""
    n8 = _round_up(max(n_rows, 1), 8)
    d_lanes = _round_up(max(d, 1), 128)        # VMEM lane padding of the tile
    # Budget for the two double-buffered f32 input tiles (16 * d_lanes B/row):
    # ~12 MiB on 64-MiB v7x, ~24 MiB on 128-MiB v5e/v6e.
    budget = (12 if vmem_capacity <= 64 * 1024 * 1024 else 24) * 1024 * 1024
    cap = budget // (16 * d_lanes)
    cap = max(8, (cap // 8) * 8)
    tm = min(tm_max, cap, n8)
    # Only dual-TC chips (v7x) benefit from >= num_tc grid steps; on single-TC
    # v5e/v6e halving the tile just doubles per-step pipeline overhead.
    if num_tc >= 2 and n8 >= 8 * num_tc:
        tm = min(tm, _round_up(n8 // num_tc, 8))
    return max(8, (tm // 8) * 8)


def _weight_vmem_bytes(wgt, w1t, b1, w2t, b2):
    """Resident (single-buffered) VMEM bytes of the constant arrays, with
    (8, 128) layout padding."""
    total = 0
    for a in (wgt, w1t, b1, w2t, b2):
        r, c = a.shape
        total += _round_up(r, 8) * _round_up(c, 128) * a.dtype.itemsize
    return total


def gated_feature_fusion(x1, x2, params, *, tm_max=1024):
    """x1, x2: (..., D) float32. Returns (..., Dout) float32."""
    (wgt, scalars, w1t, b1, w2t, b2) = params
    D = x1.shape[-1]
    Dout = w2t.shape[-1]
    lead = x1.shape[:-1]

    x1f = x1.reshape(-1, D)
    x2f = x2.reshape(-1, D)
    N = x1f.shape[0]

    vmem_capacity, num_tc = _chip_info()
    tm = _pick_row_tile(N, D, tm_max, vmem_capacity, num_tc)
    num_tiles = pl.cdiv(N, tm)
    n_pad = num_tiles * tm
    if n_pad != N:
        x1f = jnp.pad(x1f, ((0, n_pad - N), (0, 0)))
        x2f = jnp.pad(x2f, ((0, n_pad - N), (0, 0)))

    rows = lambda i: (i, 0)          # row-tiled arrays

    # VMEM requirement derived from the real (lane-padded) tile sizes.
    d_lanes = _round_up(D, 128)
    dout_lanes = _round_up(Dout, 128)
    need = (2 * 2 * tm * d_lanes * 4          # x1/x2 tiles, double-buffered
            + 2 * tm * dout_lanes * 4         # output tile, double-buffered
            + _weight_vmem_bytes(wgt, w1t, b1, w2t, b2)   # single-buffered
            + (4 << 20))                      # scratch / compiler slack
    vmem_limit = max(need, 16 << 20)
    vmem_limit = min(vmem_limit, vmem_capacity - (8 << 20))

    # Advisory cost estimate so XLA schedules neighbouring ops well.
    flops = int(2 * n_pad * D * (D + Dout)    # fc1 + fc2
                + 6 * n_pad * D               # gate mults/adds + blend
                + 4 * n_pad * D)              # reduce + bias/PReLU adds
    bytes_accessed = int(4 * n_pad * (2 * D + Dout)
                         + w1t.size * w1t.dtype.itemsize
                         + w2t.size * w2t.dtype.itemsize
                         + 4 * (3 * D + Dout + 2))
    cost = pl.CostEstimate(flops=flops, transcendentals=int(2 * n_pad),
                           bytes_accessed=bytes_accessed)

    # TODO(synk): lane-dense output packing (Dout<128 -> masked vst) is only
    # worth doing if a bundle dump shows the store slot binding; at small D
    # the step is MXU-cadence-bound, so it is left as-is.
    out = pl.pallas_call(
        _gated_fusion_kernel,
        out_shape=jax.ShapeDtypeStruct((n_pad, Dout), x1.dtype),
        grid_spec=pltpu.PrefetchScalarGridSpec(
            num_scalar_prefetch=0,
            grid=(num_tiles,),
            in_specs=[
                pl.BlockSpec((tm, D), rows),                        # x1 rows
                pl.BlockSpec((tm, D), rows),                        # x2 rows
                pl.BlockSpec(memory_space=pltpu.MemorySpace.SMEM),  # [bg, alpha]
                # Constant arrays: whole-array VMEM residents, single-buffered
                # (no per-step DMA, half the VMEM of a revisited block).
                pl.BlockSpec(memory_space=pltpu.MemorySpace.VMEM),  # Wg (2, D)
                pl.BlockSpec(memory_space=pltpu.MemorySpace.VMEM),  # W1^T (D, D)
                pl.BlockSpec(memory_space=pltpu.MemorySpace.VMEM),  # b1 (1, D)
                pl.BlockSpec(memory_space=pltpu.MemorySpace.VMEM),  # W2^T (D, Dout)
                pl.BlockSpec(memory_space=pltpu.MemorySpace.VMEM),  # b2 (1, Dout)
            ],
            out_specs=pl.BlockSpec((tm, Dout), rows),
        ),
        compiler_params=pltpu.CompilerParams(
            dimension_semantics=("parallel",),
            vmem_limit_bytes=int(vmem_limit)),
        cost_estimate=cost,
    )(x1f, x2f, scalars, wgt, w1t, b1, w2t, b2)

    if n_pad != N:
        out = out[:N]
    return out.reshape(*lead, Dout)


def init_params(key, input_dim, output_dim, matmul_dtype=jnp.float32):
    """Deterministic synthetic init matching nn.Linear / nn.PReLU shapes.

    matmul_dtype=jnp.bfloat16 quantizes the fc1/fc2 weights (intentional
    numerics change vs. the pure-f32 PyTorch module); the gate weights and
    all accumulation stay f32.
    """
    k = jax.random.split(key, 6)
    D, Dout = input_dim, output_dim
    # gate_fc: Linear(2D, 1) -> weight (1, 2D), bias scalar.  Stored merged as
    # (2, D): row 0 multiplies x1, row 1 multiplies x2.
    wg = jax.random.normal(k[0], (1, 2 * D), jnp.float32) * 0.1
    bg = jax.random.normal(k[1], (), jnp.float32) * 0.1
    wgt = jnp.concatenate([wg[:, :D], wg[:, D:]], axis=0)        # (2, D)
    # fc1: Linear(D, D) -> weight (D, D); store transposed for x @ W^T.
    w1 = jax.random.normal(k[2], (D, D), jnp.float32) * 0.1
    b1 = jax.random.normal(k[3], (1, D), jnp.float32) * 0.1
    # PReLU default slope 0.25 (single parameter).
    alpha = jnp.asarray(0.25, jnp.float32)
    # fc2: Linear(D, Dout) -> weight (Dout, D); store transposed.
    w2 = jax.random.normal(k[4], (Dout, D), jnp.float32) * 0.1
    b2 = jax.random.normal(k[5], (1, Dout), jnp.float32) * 0.1
    scalars = jnp.stack([bg, alpha]).astype(jnp.float32)         # SMEM: [bg, alpha]
    return (wgt,
            scalars,
            w1.T.astype(matmul_dtype), b1,
            w2.T.astype(matmul_dtype), b2)


def _reference(x1, x2, params):
    (wgt, scalars, w1t, b1, w2t, b2) = params
    bg, alpha = scalars[0], scalars[1]
    logit = jnp.sum(x1 * wgt[0] + x2 * wgt[1], axis=-1, keepdims=True) + bg
    g = jax.nn.sigmoid(logit)
    fused = g * x1 + (1.0 - g) * x2
    h = (fused.astype(w1t.dtype) @ w1t).astype(jnp.float32) + b1
    h = jnp.where(h > 0, h, alpha * h)
    return (h.astype(w2t.dtype) @ w2t).astype(jnp.float32) + b2


if __name__ == "__main__":
    input_dim, output_dim = 32, 16
    key = jax.random.PRNGKey(0)
    kx1, kx2, kx3, kx4, kx5, kx6, kp = jax.random.split(key, 7)
    params = init_params(kp, input_dim, output_dim)

    # Small case (typical decode-block shapes).
    B, S = 2, 8
    x1 = jax.random.normal(kx1, (B, S, input_dim), jnp.float32)
    x2 = jax.random.normal(kx2, (B, S, input_dim), jnp.float32)
    out = jax.block_until_ready(gated_feature_fusion(x1, x2, params))
    ref = _reference(x1, x2, params)
    assert out.shape == (B, S, output_dim)
    assert jnp.allclose(out, ref, atol=1e-4, rtol=1e-4), \
        float(jnp.max(jnp.abs(out - ref)))

    # Ragged row count: exercises the pl.cdiv + zero-padding path.
    B2, S2 = 3, 7
    y1 = jax.random.normal(kx3, (B2, S2, input_dim), jnp.float32)
    y2 = jax.random.normal(kx4, (B2, S2, input_dim), jnp.float32)
    out2 = jax.block_until_ready(gated_feature_fusion(y1, y2, params))
    ref2 = _reference(y1, y2, params)
    assert out2.shape == (B2, S2, output_dim)
    assert jnp.allclose(out2, ref2, atol=1e-4, rtol=1e-4), \
        float(jnp.max(jnp.abs(out2 - ref2)))

    # Larger row count: exercises the big row tile (full tile on single-TC
    # v5e/v6e, split into >= 2 "parallel" steps on dual-TC v7x).
    B3, S3 = 4, 256
    z1 = jax.random.normal(kx5, (B3, S3, input_dim), jnp.float32)
    z2 = jax.random.normal(kx6, (B3, S3, input_dim), jnp.float32)
    out3 = jax.block_until_ready(gated_feature_fusion(z1, z2, params))
    ref3 = _reference(z1, z2, params)
    assert out3.shape == (B3, S3, output_dim)
    assert jnp.allclose(out3, ref3, atol=1e-4, rtol=1e-4), \
        float(jnp.max(jnp.abs(out3 - ref3)))

    print("KERNEL_OK")
</pallas_src>

<mosaic_0001>
module attributes {stable_mosaic.version = 11 : i64} {
  func.func @_gated_fusion_kernel(%arg0: i32, %arg1: memref<16x32xf32, #tpu.memory_space<vmem>>, %arg2: memref<16x32xf32, #tpu.memory_space<vmem>>, %arg3: memref<2xf32, #tpu.memory_space<smem>>, %arg4: memref<2x32xf32, #tpu.memory_space<vmem>>, %arg5: memref<32x32xf32, #tpu.memory_space<vmem>>, %arg6: memref<1x32xf32, #tpu.memory_space<vmem>>, %arg7: memref<32x16xf32, #tpu.memory_space<vmem>>, %arg8: memref<1x16xf32, #tpu.memory_space<vmem>>, %arg9: memref<16x16xf32, #tpu.memory_space<vmem>>) attributes {dimension_semantics = [#tpu.dimension_semantics<parallel>], iteration_bounds = array<i64: 1>, scalar_prefetch = 0 : i64, scratch_operands = 0 : i64, tpu.core_type = #tpu.core_type<tc>, window_params = [{transform_indices = @transform_0, window_bounds = array<i64: 16, 32>}, {transform_indices = @transform_1, window_bounds = array<i64: 16, 32>}, {transform_indices = @transform_2, window_bounds = array<i64: 2>}, {pipeline_mode = #tpu.pipeline_mode<synchronous>, transform_indices = @transform_3, window_bounds = array<i64: 2, 32>}, {pipeline_mode = #tpu.pipeline_mode<synchronous>, transform_indices = @transform_4, window_bounds = array<i64: 32, 32>}, {pipeline_mode = #tpu.pipeline_mode<synchronous>, transform_indices = @transform_5, window_bounds = array<i64: 1, 32>}, {pipeline_mode = #tpu.pipeline_mode<synchronous>, transform_indices = @transform_6, window_bounds = array<i64: 32, 16>}, {pipeline_mode = #tpu.pipeline_mode<synchronous>, transform_indices = @transform_7, window_bounds = array<i64: 1, 16>}, {transform_indices = @transform_8, window_bounds = array<i64: 16, 16>}]} {
    %c0 = arith.constant 0 : index
    %c0_0 = arith.constant 0 : index
    %0 = vector.load %arg1[%c0, %c0_0] : memref<16x32xf32, #tpu.memory_space<vmem>>, vector<16x32xf32>
    %c0_1 = arith.constant 0 : index
    %c0_2 = arith.constant 0 : index
    %1 = vector.load %arg2[%c0_1, %c0_2] : memref<16x32xf32, #tpu.memory_space<vmem>>, vector<16x32xf32>
    %c0_3 = arith.constant 0 : index
    %c0_4 = arith.constant 0 : index
    %2 = vector.load %arg4[%c0_3, %c0_4] : memref<2x32xf32, #tpu.memory_space<vmem>>, vector<2x32xf32>
    %3 = vector.extract_strided_slice %2 {offsets = [0, 0], sizes = [1, 32], strides = [1, 1]} : vector<2x32xf32> to vector<1x32xf32>
    %4 = vector.broadcast %3 : vector<1x32xf32> to vector<16x32xf32>
    %5 = arith.mulf %0, %4 : vector<16x32xf32>
    %6 = vector.extract_strided_slice %2 {offsets = [1, 0], sizes = [1, 32], strides = [1, 1]} : vector<2x32xf32> to vector<1x32xf32>
    %7 = vector.broadcast %6 : vector<1x32xf32> to vector<16x32xf32>
    %8 = arith.mulf %1, %7 : vector<16x32xf32>
    %9 = arith.addf %5, %8 : vector<16x32xf32>
    %cst = arith.constant dense<0.000000e+00> : vector<16xf32>
    %10 = vector.multi_reduction <add>, %9, %cst [1] : vector<16x32xf32> to vector<16xf32>
    %11 = vector.shape_cast %10 : vector<16xf32> to vector<16x1xf32>
    %c0_5 = arith.constant 0 : index
    %12 = memref.load %arg3[%c0_5] : memref<2xf32, #tpu.memory_space<smem>>
    %13 = vector.broadcast %12 : f32 to vector<16x1xf32>
    %14 = arith.addf %11, %13 : vector<16x1xf32>
    %15 = arith.negf %14 : vector<16x1xf32>
    %16 = math.exp %15 : vector<16x1xf32>
    %cst_6 = arith.constant 1.000000e+00 : f32
    %17 = vector.broadcast %cst_6 : f32 to vector<16x1xf32>
    %18 = arith.addf %17, %16 : vector<16x1xf32>
    %19 = arith.divf %17, %18 : vector<16x1xf32>
    %20 = arith.subf %0, %1 : vector<16x32xf32>
    %21 = vector.broadcast %19 : vector<16x1xf32> to vector<16x32xf32>
    %22 = arith.mulf %21, %20 : vector<16x32xf32>
    %23 = arith.addf %1, %22 : vector<16x32xf32>
    %c0_7 = arith.constant 0 : index
    %c0_8 = arith.constant 0 : index
    %24 = vector.load %arg5[%c0_7, %c0_8] : memref<32x32xf32, #tpu.memory_space<vmem>>, vector<32x32xf32>
    %cst_9 = arith.constant dense<0.000000e+00> : vector<16x32xf32>
    %25 = tpu.matmul %23, %24, %cst_9 {dimension_numbers = #tpu.dot_dimension_numbers<[1], [0], [0], [1], [0, 0, 1, 1], [], []>} : vector<16x32xf32>, vector<32x32xf32>, vector<16x32xf32> -> vector<16x32xf32>
    %c0_10 = arith.constant 0 : index
    %c0_11 = arith.constant 0 : index
    %26 = vector.load %arg6[%c0_10, %c0_11] : memref<1x32xf32, #tpu.memory_space<vmem>>, vector<1x32xf32>
    %27 = vector.broadcast %26 : vector<1x32xf32> to vector<16x32xf32>
    %28 = arith.addf %25, %27 : vector<16x32xf32>
    %cst_12 = arith.constant 0.000000e+00 : f32
    %29 = vector.broadcast %cst_12 : f32 to vector<16x32xf32>
    %30 = arith.cmpf ogt, %28, %29 : vector<16x32xf32>
    %c1 = arith.constant 1 : index
    %31 = memref.load %arg3[%c1] : memref<2xf32, #tpu.memory_space<smem>>
    %32 = vector.broadcast %31 : f32 to vector<16x32xf32>
    %33 = arith.mulf %32, %28 : vector<16x32xf32>
    %34 = arith.select %30, %28, %33 : vector<16x32xi1>, vector<16x32xf32>
    %c0_13 = arith.constant 0 : index
    %c0_14 = arith.constant 0 : index
    %35 = vector.load %arg7[%c0_13, %c0_14] : memref<32x16xf32, #tpu.memory_space<vmem>>, vector<32x16xf32>
    %cst_15 = arith.constant dense<0.000000e+00> : vector<16x16xf32>
    %36 = tpu.matmul %34, %35, %cst_15 {dimension_numbers = #tpu.dot_dimension_numbers<[1], [0], [0], [1], [0, 0, 1, 1], [], []>} : vector<16x32xf32>, vector<32x16xf32>, vector<16x16xf32> -> vector<16x16xf32>
    %c0_16 = arith.constant 0 : index
    %c0_17 = arith.constant 0 : index
    %37 = vector.load %arg8[%c0_16, %c0_17] : memref<1x16xf32, #tpu.memory_space<vmem>>, vector<1x16xf32>
    %38 = vector.broadcast %37 : vector<1x16xf32> to vector<16x16xf32>
    %39 = arith.addf %36, %38 : vector<16x16xf32>
    %c0_18 = arith.constant 0 : index
    %c0_19 = arith.constant 0 : index
    %40 = vector.load %arg9[%c0_18, %c0_19] : memref<16x16xf32, #tpu.memory_space<vmem>>, vector<16x16xf32>
    tpu.vector_store %arg9[%c0_18, %c0_19], %39 {strides = array<i32>} : memref<16x16xf32, #tpu.memory_space<vmem>>, vector<16x16xf32>,
    return
  }
  func.func @transform_0(%arg0: i32) -> (i32, i32) {
    %c0_i32 = arith.constant 0 : i32
    %c0_i32_0 = arith.constant 0 : i32
    return %arg0, %c0_i32 : i32, i32
  }
  func.func @transform_1(%arg0: i32) -> (i32, i32) {
    %c0_i32 = arith.constant 0 : i32
    %c0_i32_0 = arith.constant 0 : i32
    return %arg0, %c0_i32 : i32, i32
  }
  func.func @transform_2(%arg0: i32) -> i32 {
    %c0_i32 = arith.constant 0 : i32
    %c0_i32_0 = arith.constant 0 : i32
    return %c0_i32 : i32
  }
  func.func @transform_3(%arg0: i32) -> (i32, i32) {
    %c0_i32 = arith.constant 0 : i32
    %c0_i32_0 = arith.constant 0 : i32
    %c0_i32_1 = arith.constant 0 : i32
    return %c0_i32, %c0_i32_0 : i32, i32
  }
  func.func @transform_4(%arg0: i32) -> (i32, i32) {
    %c0_i32 = arith.constant 0 : i32
    %c0_i32_0 = arith.constant 0 : i32
    %c0_i32_1 = arith.constant 0 : i32
    return %c0_i32, %c0_i32_0 : i32, i32
  }
  func.func @transform_5(%arg0: i32) -> (i32, i32) {
    %c0_i32 = arith.constant 0 : i32
    %c0_i32_0 = arith.constant 0 : i32
    %c0_i32_1 = arith.constant 0 : i32
    return %c0_i32, %c0_i32_0 : i32, i32
  }
  func.func @transform_6(%arg0: i32) -> (i32, i32) {
    %c0_i32 = arith.constant 0 : i32
    %c0_i32_0 = arith.constant 0 : i32
    %c0_i32_1 = arith.constant 0 : i32
    return %c0_i32, %c0_i32_0 : i32, i32
  }
  func.func @transform_7(%arg0: i32) -> (i32, i32) {
    %c0_i32 = arith.constant 0 : i32
    %c0_i32_0 = arith.constant 0 : i32
    %c0_i32_1 = arith.constant 0 : i32
    return %c0_i32, %c0_i32_0 : i32, i32
  }
  func.func @transform_8(%arg0: i32) -> (i32, i32) {
    %c0_i32 = arith.constant 0 : i32
    %c0_i32_0 = arith.constant 0 : i32
    return %arg0, %c0_i32 : i32, i32
  }
}

</mosaic_0001>

<bundles_post_ra>
// kernel: tpu_custom_call.1
= control target key start
LH: loop header
LB: loop body
LE: loop exit
PB: predicated region body
PF: predicated region fallthrough
CT: control target
= control target key end

     0   :  { %13 = vsyncpa [#allocation3], 0  ;;  %s456_s0 = inlined_call_operand.vmem [shape: f32[16,32], index: 0, kind: input, shape index: {}]   ;;  %s457_s1 = inlined_call_operand.hbm [shape: f32[16,32], index: 1, kind: input, shape index: {}]   ;;  %s458_s2 = inlined_call_operand.vmem [shape: f32[2], index: 2, kind: input, shape index: {}]   ;;  %s459_s3 = inlined_call_operand.vmem [shape: f32[2,32], index: 3, kind: input, shape index: {}]   ;;  %s460_s4 = inlined_call_operand.vmem [shape: f32[32,32], index: 4, kind: input, shape index: {}]   ;;  %s461_s5 = inlined_call_operand.vmem [shape: f32[1,32], index: 5, kind: input, shape index: {}]   ;;  %s462_s6 = inlined_call_operand.vmem [shape: f32[32,16], index: 6, kind: input, shape index: {}]   ;;  %s463_s7 = inlined_call_operand.vmem [shape: f32[1,16], index: 7, kind: input, shape index: {}]   ;;  %s464_s8 = inlined_call_operand.hbm [shape: f32[16,16], index: 8, kind: output, shape index: {}]  }
   0x1   :  { %14 = vsyncpa [#allocation5], 0 }
   0x2   :  { %15 = vsyncpa [#allocation4], 0  ;;  %s22_s29 = sshll.u32 %s457_s1, 4  ;;  %s328_s30 = smov [#allocation2]   ;;  %s23_s29 = int_to_ptr.hbm [resolvable:$true] %s22_s29 }
   0x3   :  { %s24_s9 = sshll.u32 %s328_s30, 4  ;;  %s36_s12 = sshll.u32 %s458_s2, 4  ;;  %s25_s9 = int_to_ptr.vmem [resolvable:$true] %s24_s9  ;;  %s37_s12 = int_to_ptr.vmem [resolvable:$true] %s36_s12 }
   0x4   :  { %s329_s13 = smov 128   ;;  %s330_s14 = smov 8  }
   0x5   :  { %30 = dma.hbm_to_vmem [thread:$0]  %s23_s29, 256, %s25_s9, [#allocation3], %s329_s13, %s329_s13, %s330_s14  }
   0x6   :  { %s331_s15 = smov [#allocation6]  }
   0x7   :  { %39 = dma.vmem_to_smem %s37_s12, 16, %s331_s15, [#allocation5]  }
   0x8   :  { %322 = dma.done.wait [#allocation3], 256  }
   0x9   :  { %323 = vsyncadd [#allocation3], 4294967040 }
   0xa   :  { %324 = dma.done.wait [#allocation5], 16  }
   0xb   :  { %325 = vsyncadd [#allocation5], 4294967280 }
   0xc   :  { %58 = sfence }
   0xd   :  { %v390_v0 = vld [vmem:[%s456_s0 + $0x8] sm:$0xff]  ;;  %v63_v2 = vld [vmem:[%s459_s3] sm:$0x3]  ;;  %vm72_vm0 = vcmask 261120   ;;  %v130_v15 = vld [vmem:[%s460_s4 + $0x18] sm:$0xff]  ;;  %s236_s12 = sld [smem:[#allocation6 + $0x1]] }
   0xe   :  { %v392_v1 = vld [vmem:[#allocation2 + $0x8] sm:$0xff]  ;;  %v64_v3 = vperm.slane %v63_v2, 0  ;;  %v67_v4 = vperm.slane %v63_v2, 1  ;;  %v400_v5 = vld [vmem:[%s456_s0] sm:$0xff]  ;;  %s79_s0 = sld [smem:[#allocation6]]  ;;  %239 = vmatpush.msra.mxu2 %v130_v15  ;;  %153 = vmatpush.msra.mxu0 %v130_v15  ;;  %v129_v16 = vld [vmem:[%s460_s4 + $0x10] sm:$0xff] }
   0xf   :  { %v402_v6 = vld [vmem:[#allocation2] sm:$0xff]  ;;  %v128_v18 = vld [vmem:[%s460_s4 + $0x8] sm:$0xff]  ;;  %v175_v27 = vld [vmem:[%s462_s6 + $0x18] sm:$0xff]  ;;  %v122_v37 = vsub.f32 %v390_v0, %v392_v1  ;;  %vm209_vm11 = vcmask 130048   ;;  %s218_s19 = sshll.u32 %s464_s8, 4  ;;  %s219_s19 = int_to_ptr.hbm [resolvable:$true] %s218_s19 }
  0x10   :  { %v66_v7 = vmul.f32 %v64_v3, %v390_v0  ;;  %v69_v8 = vmul.f32 %v67_v4, %v392_v1  ;;  %v65_v10 = vmul.f32 %v64_v3, %v400_v5  ;;  %v68_v11 = vmul.f32 %v67_v4, %v402_v6  ;;  %240 = vmatpush.msra.mxu2 %v129_v16  ;;  %v127_v19 = vld [vmem:[%s460_s4] sm:$0xff]  ;;  %v174_v57 = vld [vmem:[%s462_s6 + $0x10] sm:$0xff]  ;;  %v173_v58 = vld [vmem:[%s462_s6 + $0x8] sm:$0xff] }
  0x11   :  { %154 = vmatpush.msra.mxu0 %v129_v16  ;;  %243 = vmatpush.msra.mxu3 %v175_v27  ;;  %v121_v50 = vsub.f32 %v400_v5, %v402_v6  ;;  %v172_v59 = vld [vmem:[%s462_s6] sm:$0xff] }
  0x12   :  { %v71_v9 = vadd.f32 %v69_v8, %v66_v7  ;;  %v70_v13 = vadd.f32 %v68_v11, %v65_v10  ;;  %241 = vmatpush.msra.mxu2 %v128_v18  ;;  %198 = vmatpush.msra.mxu1 %v175_v27  ;;  %v252_v60 = vld [vmem:[%s461_s5] ss:$0 sm:$0xff]  ;;  %s332_s5 = smov [#allocation7]  }
  0x13   :  { %155 = vmatpush.msra.mxu0 %v128_v18  ;;  %244 = vmatpush.msra.mxu3 %v174_v57  ;;  %v167_v62 = vstv %s236_s12  ;;  %s216_s2 = sshll.u32 %s332_s5, 4  ;;  %s217_s2 = int_to_ptr.vmem [resolvable:$true] %s216_s2 }
  0x14   :  { %v76_v12 = vsel %vm72_vm0, %v71_v9, 0.0  ;;  %v73_v14 = vsel %vm72_vm0, %v70_v13, 0.0  ;;  %v80_v17 = vstv %s79_s0  ;;  %242 = vmatpush.msra.mxu2 %v127_v19  ;;  %199 = vmatpush.msra.mxu1 %v174_v57 }
  0x15   :  { %77 = vadd.xlane.f32.xlu0 %v76_v12  ;;  %156 = vmatpush.msra.mxu0 %v127_v19 }
  0x16   :  { %245 = vmatpush.msra.mxu3 %v173_v58  ;;  %200 = vmatpush.msra.mxu1 %v173_v58 }
  0x18   :  { %246 = vmatpush.msra.mxu3 %v172_v59  ;;  %201 = vmatpush.msra.mxu1 %v172_v59 }
  0x1d   :  { %74 = vadd.xlane.f32.xlu0 %v73_v14 }
  0x88   :  { %v78_v20 = vpop.xlane.xlu0 %77 }
  0x89   :  { %v82_v21 = vadd.f32 %v80_v17, %v78_v20 }
  0x8b   :  { %v233_v22 = vmul.f32 -1.442695, %v82_v21 }
  0x8d   :  { %254 = vpow2.f32 %v233_v22 }
  0x90   :  { %v75_v23 = vpop.xlane.xlu0 %74 }
  0x91   :  { %v81_v24 = vadd.f32 %v80_v17, %v75_v23 }
  0x93   :  { %v255_v25 = vpop.eup %254  ;;  %v232_v26 = vmul.f32 -1.442695, %v81_v24 }
  0x94   :  { %v90_v28 = vadd.f32 1.0, %v255_v25 }
  0x95   :  { %256 = vpow2.f32 %v232_v26 }
  0x96   :  { %258 = vrcp.f32 %v90_v28  ;;  %v117_v34 = vand.u32 2147483648, %v90_v28  ;;  %v115_v36 = vand.u32 2147483647, %v90_v28  ;;  %vm111_vm2 = vweird.f32 %v90_v28 }
  0x98   :  { %v118_v40 = vor.u32 1.1754944e-38, %v117_v34  ;;  %vm116_vm4 = vcmp.eq.f32.partialorder %v115_v36, 8.507059e+37 }
  0x9b   :  { %v257_v29 = vpop.eup %256 }
  0x9c   :  { %v259_v30 = vpop.eup %258  ;;  %v89_v31 = vadd.f32 1.0, %v257_v29 }
  0x9d   :  { %v107_v32 = vmul.f32 %v259_v30, %v90_v28  ;;  %vm112_vm1 = vweird.f32 %v259_v30 }
  0x9e   :  { %260 = vrcp.f32 %v89_v31  ;;  %vm113_vm3 = vmor %vm111_vm2, %vm112_vm1  ;;  %v102_v46 = vand.u32 2147483648, %v89_v31  ;;  %v100_v49 = vand.u32 2147483647, %v89_v31  ;;  %vm96_vm6 = vweird.f32 %v89_v31 }
  0x9f   :  { %v108_v33 = vsub.f32 1.0, %v107_v32 }
  0xa0   :  { %v103_v52 = vor.u32 1.1754944e-38, %v102_v46  ;;  %vm101_vm8 = vcmp.eq.f32.partialorder %v100_v49, 8.507059e+37 }
  0xa1   :  { %v109_v35 = vmul.f32 %v259_v30, %v108_v33 }
  0xa3   :  { %v110_v38 = vadd.f32 %v259_v30, %v109_v35 }
  0xa4   :  { %v261_v39 = vpop.eup %260 }
  0xa5   :  { %v92_v41 = vmul.f32 %v261_v39, %v89_v31  ;;  %v114_v42 = vsel %vm113_vm3, %v259_v30, %v110_v38  ;;  %vm97_vm5 = vweird.f32 %v261_v39 }
  0xa6   :  { %v119_v43 = vsel %vm116_vm4, %v118_v40, %v114_v42  ;;  %vm98_vm7 = vmor %vm96_vm6, %vm97_vm5 }
  0xa7   :  { %v93_v44 = vsub.f32 1.0, %v92_v41  ;;  %v124_v45 = vmul.f32 %v122_v37, %v119_v43 }
  0xa9   :  { %v126_v47 = vadd.f32 %v124_v45, %v392_v1  ;;  %v94_v48 = vmul.f32 %v261_v39, %v93_v44 }
  0xab   :  { %235 = vmatmul.msk.f32.vlgmr.msra.gmra.mxu2 %vm72_vm0, %v126_v47  ;;  %v95_v51 = vadd.f32 %v261_v39, %v94_v48 }
  0xad   :  { %v99_v53 = vsel %vm98_vm7, %v261_v39, %v95_v51 }
  0xae   :  { %v104_v54 = vsel %vm101_vm8, %v103_v52, %v99_v53 }
  0xaf   :  { %v123_v55 = vmul.f32 %v121_v50, %v104_v54 }
  0xb1   :  { %v125_v56 = vadd.f32 %v123_v55, %v402_v6  ;;  %v253_v6 = vld [vmem:[%s463_s7] ss:$0 sm:$0xff] }
  0xb3   :  { %234 = vmatmul.msk.f32.vlgmr.msra.gmra.mxu0 %vm72_vm0, %v125_v56 }
 0x12e   :  { %v161_v61 = vpop.f32.mrf.mxu2 }
 0x12f   :  { %v162_v63 = vadd.f32 %v252_v60, %v161_v61 }
 0x130   :  { %v158_v0 = vpop.f32.mrf.mxu0 }
 0x131   :  { %v169_v1 = vmul.f32 %v167_v62, %v162_v63  ;;  %v159_v2 = vadd.f32 %v252_v60, %v158_v0  ;;  %vm165_vm9 = vcmp.gt.f32.partialorder %v162_v63, 0.0 }
 0x133   :  { %v168_v3 = vmul.f32 %v167_v62, %v159_v2  ;;  %v171_v4 = vsel %vm165_vm9, %v162_v63, %v169_v1  ;;  %vm164_vm10 = vcmp.gt.f32.partialorder %v159_v2, 0.0 }
 0x134   :  { %238 = vmatmul.msk.f32.vlgmr.msra.gmra.mxu3 %vm72_vm0, %v171_v4 }
 0x135   :  { %v170_v5 = vsel %vm164_vm10, %v159_v2, %v168_v3 }
 0x136   :  { %237 = vmatmul.msk.f32.vlgmr.msra.gmra.mxu1 %vm72_vm0, %v170_v5 }
 0x1b3   :  { %v203_v7 = vpop.f32.mrf.mxu1 }
 0x1b4   :  { %v204_v8 = vadd.f32 %v253_v6, %v203_v7 }
 0x1b6   :  { %210 = vst.msk [vmem:[#allocation7] sm:$0xff] %vm209_vm11, %v204_v8 }
 0x1b7   :  { %v206_v9 = vpop.f32.mrf.mxu3 }
 0x1b8   :  { %v207_v10 = vadd.f32 %v253_v6, %v206_v9 }
 0x1ba   :  { %211 = vst.msk [vmem:[#allocation7 + $0x8] sm:$0xff] %vm209_vm11, %v207_v10 }
 0x1bb   :  { %224 = dma.vmem_to_hbm [thread:$0]  %s217_s2, 256, %s219_s19, [#allocation4], %s329_s13, %s329_s13, %s330_s14  }
 0x1bc   :  { %326 = dma.done.wait [#allocation4], 256  }
 0x1bd   :  { %327 = vsyncadd [#allocation4], 4294967040 }
 0x1be   :  { %229 = vsyncpa [#allocation3], 1 }
 0x1bf   :  { %230 = vsyncpa [#allocation4], 1 }
 0x1c0   :  { %231 = vsyncpa [#allocation5], 1 }

</bundles_post_ra>
